<compile_context>
chip_gen: v7x
topology: tpu7x:2x2x1
jax: 0.10.0
libtpu: 0.0.40
codegen_flags: <defaults>
</compile_context>

<pallas_src>
import functools

import jax
import jax.numpy as jnp
from jax.experimental import pallas as pl
from jax.experimental.pallas import tpu as pltpu


# ----------------------------------------------------------------------------
# Pallas kernel: one S2V_DUEL forward per grid step (T rounds + dueling head)
# ----------------------------------------------------------------------------
def s2v_duel_kernel(feat_ref, gth_ref, dstT_ref, wd_ref, whA_ref, whB_ref, out_ref,
                    *, T: int, N: int, E: int, B: int, BP: int, D: int, H: int):
  f32 = jnp.float32
  bf16 = jnp.bfloat16
  mm = lambda a, b: jnp.dot(a, b, preferred_element_type=f32)
  relu = lambda a: jnp.maximum(a, 0.0)

  # ---- loop-invariant parameter loads (weights stay resident across the grid) ----
  w_n2l = wd_ref[0:8, :]                               # [8, D] (rows >= node_dim are 0)
  w_e2l = wd_ref[8:16, :]                              # [8, D] (rows >= edge_dim are 0)
  p_conv = wd_ref[16:16 + D, :]                        # [D, D]
  t12 = wd_ref[16 + D:16 + 3 * D, :]                   # [2D, D] fused [t1; t2]
  q_wa = wd_ref[16 + 3 * D:16 + 4 * D, :]              # [D, H]  q_reg weight, action half
  q_wp = wd_ref[16 + 4 * D:16 + 5 * D, :]              # [D, H]  q_reg weight, pooled half
  q_b = wd_ref[16 + 5 * D:16 + 5 * D + 8, :]           # [BP, H] pre-broadcast bias

  H8 = 8 * H
  fcva_w = whA_ref[0:H, :]                             # [H, 8H]   fc_value | fc_adv
  fcva_b = whA_ref[H:H + 8, :]                         # [BP, 8H]  pre-broadcast bias
  va_w = whB_ref[0:H8, :]                              # [8H, 128] col0=value, col1=adv
  va_b = whB_ref[H8:H8 + 8, :]                         # [BP, 128] pre-broadcast bias

  # ---- node / edge input embedding ------------------------------------------
  x = relu(mm(feat_ref[0:N, :], w_n2l))                # [N, D]  relu(x @ w_n2l)
  ea = mm(feat_ref[N:N + E, :], w_e2l)                 # [E, D]  edge_attr @ w_e2l

  src_oh = gth_ref[0:E, :]                             # [E, N] bf16 gather operator
  dstT = dstT_ref[...]                                 # [N, E] bf16 scatter_add operator

  # ---- T rounds of structure2vec message passing (T small & static) ---------
  for _ in range(T):
    msg = mm(x, p_conv)                                # [N, D]
    edge_rep = relu(mm(src_oh, msg.astype(bf16)) + ea)  # msg[edge_index[0]] + edge_attr
    e2n = mm(dstT, edge_rep.astype(bf16))              # scatter_add -> nodes
    x = relu(mm(jnp.concatenate([e2n, x], axis=-1), t12))   # e2n@t1 + x@t2

  # ---- action gather + graph pooling fused into ONE matmul ------------------
  ap = mm(gth_ref[E:E + 2 * BP, :], x.astype(bf16))    # [2*BP, D]
  act = ap[0:BP, :]                                    # x[data.y]
  y_pot = ap[BP:2 * BP, :]                             # scatter_add(x, batch)

  # ---- dueling head (concat-free; value|adv paths fused, shrunk to 128 lanes) ----
  hidden = relu(mm(act, q_wa) + mm(y_pot, q_wp) + q_b)  # [BP, H]
  va_pre = mm(hidden, fcva_w) + fcva_b                  # [BP, 8H]  fc_value|fc_adv
  va = mm(va_pre, va_w) + va_b                          # [BP, 128]; col0=value, col1=adv
  value = va[:, 0:1]
  adv = va[:, 1:2]

  # mean(adv) over the REAL B graphs only (rows B..BP-1 are padding)
  row_ids = jax.lax.broadcasted_iota(jnp.int32, (BP, 1), 0)
  valid = (row_ids < B).astype(f32)
  adv_mean = jnp.sum(adv * valid) * (1.0 / B)
  q = value + adv - adv_mean                            # [BP, 1]

  out_ref[...] = jnp.broadcast_to(q, (BP, 128))         # lane-dense, unmasked store


# ----------------------------------------------------------------------------
# Packing helpers (done once, outside the hot path)
# ----------------------------------------------------------------------------
def _pad_to(a, rows, cols):
  return jnp.pad(a, ((0, rows - a.shape[0]), (0, cols - a.shape[1])))


def pack_params(params, *, node_dim, edge_dim, D, H):
  """Pack the 15 parameter tensors into three contiguous f32 slabs."""
  assert D % 8 == 0 and H % 8 == 0
  assert D == H  # TODO(synk): lane-pad the D-wide slab when embed_dim != reg_hidden
  f32 = jnp.float32
  wd = jnp.concatenate([
      _pad_to(params["w_n2l"].astype(f32), 8, D),
      _pad_to(params["w_e2l"].astype(f32), 8, D),
      params["p_node_conv"],
      params["trans_node_1"],                       # rows 0..D-1 of fused t12 (for e2n)
      params["trans_node_2"],                       # rows D..2D-1 of fused t12 (for x)
      params["qreg_w"][:D, :],                      # applied to the action embedding
      params["qreg_w"][D:, :],                      # applied to the pooled embedding
      jnp.broadcast_to(params["qreg_b"], (8, H)),
  ], axis=0).astype(f32)                            # [16 + 5D + 8, D]

  H8 = 8 * H
  fcva_w = jnp.concatenate([params["fcv_w"], params["fca_w"]], axis=1)   # [H, 8H]
  fcva_b = jnp.concatenate([params["fcv_b"], params["fca_b"]], axis=1)   # [1, 8H]
  whA = jnp.concatenate([fcva_w,
                         jnp.broadcast_to(fcva_b, (8, H8))], axis=0).astype(f32)

  # value/adv last layers packed into a 128-lane RHS (col 0 = value, col 1 = adv)
  va_w = jnp.zeros((H8, 128), f32)
  va_w = va_w.at[:4 * H, 0].set(params["val_w"][:, 0])
  va_w = va_w.at[4 * H:, 1].set(params["adv_w"][:, 0])
  va_b = jnp.zeros((1, 128), f32)
  va_b = va_b.at[0, 0].set(params["val_b"][0, 0])
  va_b = va_b.at[0, 1].set(params["adv_b"][0, 0])
  whB = jnp.concatenate([va_w,
                         jnp.broadcast_to(va_b, (8, 128))], axis=0).astype(f32)
  return wd, whA, whB                               # [184,D], [H+8,8H], [8H+8,128]


def pack_graph(x, edge_attr, edge_index, batch, y, *, N, E, B, BP):
  """Pack one graph sample's data + one-hot gather/scatter operators into 3 slabs."""
  assert N % 8 == 0 and E % 16 == 0 and BP == 8 and B <= BP
  f32, bf16 = jnp.float32, jnp.bfloat16
  feat = jnp.concatenate([_pad_to(x.astype(f32), N, 8),
                          _pad_to(edge_attr.astype(f32), E, 8)], axis=0)   # [N+E, 8]
  src_oh = jax.nn.one_hot(edge_index[0], N, dtype=f32)                     # [E, N]
  dst_ohT = jax.nn.one_hot(edge_index[1], N, dtype=f32).T                  # [N, E]
  act_oh = _pad_to(jax.nn.one_hot(y, N, dtype=f32), BP, N)                 # [BP, N]
  pool = _pad_to(jax.nn.one_hot(batch, B, dtype=f32).T, BP, N)             # [BP, N]
  gth = jnp.concatenate([src_oh, act_oh, pool], axis=0)                    # [E+2BP, N]
  # one-hot operators are exact in bf16 -> half the HBM/VMEM footprint
  return feat, gth.astype(bf16), dst_ohT.astype(bf16)


# ----------------------------------------------------------------------------
# Wrapper: G independent graph samples batched behind a parallel grid axis
# ----------------------------------------------------------------------------
def s2v_duel_forward(feat, gth, dstT, wd, whA, whB, *, T, N, E, B, BP, D, H):
  G = feat.shape[0]
  H8 = 8 * H

  def per_graph(dims):
    return pl.BlockSpec((None,) + dims, lambda g: (g, 0, 0))

  def shared(shape):
    return pl.BlockSpec(shape, lambda g: (0, 0))

  # explicit VMEM budget from actual slab bytes (+ headroom for intermediates)
  per_graph_bytes = (feat[0].size * 4 + gth[0].size * 2 + dstT[0].size * 2
                     + BP * 128 * 4)
  weight_bytes = (wd.size + whA.size + whB.size) * 4
  vmem_bytes = int(max(2 * per_graph_bytes + weight_bytes + (2 << 20), 8 << 20))

  flops_per_graph = (
      2 * (N + E) * 8 * D
      + T * (2 * N * D * D + 2 * E * N * D + 2 * N * E * D + 2 * N * (2 * D) * D)
      + 2 * (2 * BP) * N * D
      + 2 * BP * (2 * D) * H + 2 * BP * H * H8 + 2 * BP * H8 * 128)
  bytes_accessed = (feat.size * 4 + gth.size * 2 + dstT.size * 2
                    + weight_bytes + G * BP * 128 * 4)

  out = pl.pallas_call(
      functools.partial(s2v_duel_kernel, T=T, N=N, E=E, B=B, BP=BP, D=D, H=H),
      grid=(G,),
      out_shape=jax.ShapeDtypeStruct((G, BP, 128), jnp.float32),
      in_specs=[
          per_graph((N + E, 8)),          # node | edge features
          per_graph((E + 2 * BP, N)),     # src one-hot | action one-hot | pool one-hot
          per_graph((N, E)),              # scatter_add operator
          shared(wd.shape),               # D-wide weights (resident across the grid)
          shared(whA.shape),              # fc_value|fc_adv fused weight/bias
          shared(whB.shape),              # value|adv packed into 128 lanes
      ],
      out_specs=per_graph((BP, 128)),
      compiler_params=pltpu.CompilerParams(
          dimension_semantics=("parallel",),
          vmem_limit_bytes=vmem_bytes),
      cost_estimate=pl.CostEstimate(
          flops=int(G * flops_per_graph),
          transcendentals=0,
          bytes_accessed=int(bytes_accessed)),
  )(feat, gth, dstT, wd, whA, whB)
  return out[:, :B, 0:1]                 # [G, B, 1]


# ----------------------------------------------------------------------------
# Pure-JAX reference (mirrors the torch forward) for a correctness check
# ----------------------------------------------------------------------------
def s2v_duel_reference(x, edge_attr, edge_index, batch, y, params, T, n_graphs):
  relu = lambda a: jnp.maximum(a, 0.0)
  x = relu(x @ params["w_n2l"])
  ea = edge_attr @ params["w_e2l"]
  N = x.shape[0]
  for _ in range(T):
    msg = x @ params["p_node_conv"]
    n2e = msg[edge_index[0]]
    edge_rep = relu(n2e + ea)
    e2n = jax.ops.segment_sum(edge_rep, edge_index[1], num_segments=N)
    x = relu(e2n @ params["trans_node_1"] + x @ params["trans_node_2"])
  y_pot = jax.ops.segment_sum(x, batch, num_segments=n_graphs)
  act = x[y]
  embed = jnp.concatenate([act, y_pot], axis=-1)
  hidden = relu(embed @ params["qreg_w"] + params["qreg_b"])
  value = hidden @ params["fcv_w"] + params["fcv_b"]
  adv = hidden @ params["fca_w"] + params["fca_b"]
  value = value @ params["val_w"] + params["val_b"]
  adv = adv @ params["adv_w"] + params["adv_b"]
  return value + adv - jnp.mean(adv)


if __name__ == "__main__":
  # small, module-consistent sizes
  node_dim, edge_dim = 2, 4
  embed_dim = 32           # D
  reg_hidden = 32          # H
  T = 3
  w_scale = 0.01
  N, E, B = 16, 32, 2      # nodes, edges, graphs per sample
  BP = 8                   # graph rows padded to one sublane tile
  G = 4                    # independent replay samples batched per pallas_call

  key = jax.random.PRNGKey(0)
  pkey, gkey = jax.random.split(key)
  pks = list(jax.random.split(pkey, 16))
  nk = lambda: pks.pop()

  # parameters (std = w_scale / 0.01 as in __init__); linear layers stored [in, out]
  def normal(k, shape, std):
    return std * jax.random.normal(k, shape, jnp.float32)

  params = {
      "w_n2l": normal(nk(), (node_dim, embed_dim), w_scale),
      "w_e2l": normal(nk(), (edge_dim, embed_dim), w_scale),
      "p_node_conv": normal(nk(), (embed_dim, embed_dim), w_scale),
      "trans_node_1": normal(nk(), (embed_dim, embed_dim), w_scale),
      "trans_node_2": normal(nk(), (embed_dim, embed_dim), w_scale),
      "qreg_w": normal(nk(), (2 * embed_dim, reg_hidden), 0.01),
      "qreg_b": normal(nk(), (1, reg_hidden), 0.01),
      "fcv_w": normal(nk(), (reg_hidden, 4 * reg_hidden), 0.01),
      "fcv_b": normal(nk(), (1, 4 * reg_hidden), 0.01),
      "fca_w": normal(nk(), (reg_hidden, 4 * reg_hidden), 0.01),
      "fca_b": normal(nk(), (1, 4 * reg_hidden), 0.01),
      "val_w": normal(nk(), (4 * reg_hidden, 1), 0.01),
      "val_b": normal(nk(), (1, 1), 0.01),
      "adv_w": normal(nk(), (4 * reg_hidden, 1), 0.01),
      "adv_b": normal(nk(), (1, 1), 0.01),
  }

  # one-time packing into contiguous slabs
  wd, whA, whB = pack_params(params, node_dim=node_dim, edge_dim=edge_dim,
                             D=embed_dim, H=reg_hidden)

  # G independent graph samples (each one full Data batch of B graphs)
  raw, feats, gths, dstTs = [], [], [], []
  for g in range(G):
    gk = jax.random.fold_in(gkey, g)
    k1, k2, k3, k4, k5 = jax.random.split(gk, 5)
    x = jax.random.normal(k1, (N, node_dim), jnp.float32)
    edge_attr = jax.random.normal(k2, (E, edge_dim), jnp.float32)
    edge_index = jnp.stack([jax.random.randint(k3, (E,), 0, N),
                            jax.random.randint(k4, (E,), 0, N)])
    batch = jnp.concatenate([jnp.zeros(N // 2, jnp.int32),
                             jnp.ones(N - N // 2, jnp.int32)])
    y_actions = jax.random.randint(k5, (B,), 0, N)
    raw.append((x, edge_attr, edge_index, batch, y_actions))
    f, gt, dT = pack_graph(x, edge_attr, edge_index, batch, y_actions,
                           N=N, E=E, B=B, BP=BP)
    feats.append(f); gths.append(gt); dstTs.append(dT)

  feat_all = jnp.stack(feats)     # [G, N+E, 8]   f32
  gth_all = jnp.stack(gths)       # [G, E+2BP, N] bf16
  dstT_all = jnp.stack(dstTs)     # [G, N, E]     bf16

  q = s2v_duel_forward(feat_all, gth_all, dstT_all, wd, whA, whB,
                       T=T, N=N, E=E, B=B, BP=BP, D=embed_dim, H=reg_hidden)
  q = jax.block_until_ready(q)
  assert q.shape == (G, B, 1)

  # check each sample against the pure-JAX reference (bf16 operator casts ->
  # slightly looser tolerance than the all-f32 version)
  for g in range(G):
    x, edge_attr, edge_index, batch, y_actions = raw[g]
    q_ref = s2v_duel_reference(x, edge_attr, edge_index, batch, y_actions,
                               params, T, B)
    assert jnp.allclose(q[g], q_ref, atol=1e-4, rtol=1e-3), (g, q[g], q_ref)

  print("KERNEL_OK")
</pallas_src>

<mosaic_0001>
module attributes {stable_mosaic.version = 11 : i64} {
  func.func @s2v_duel_kernel(%arg0: i32, %arg1: memref<1x48x8xf32, #tpu.memory_space<vmem>>, %arg2: memref<1x48x16xbf16, #tpu.memory_space<vmem>>, %arg3: memref<1x16x32xbf16, #tpu.memory_space<vmem>>, %arg4: memref<184x32xf32, #tpu.memory_space<vmem>>, %arg5: memref<40x256xf32, #tpu.memory_space<vmem>>, %arg6: memref<264x128xf32, #tpu.memory_space<vmem>>, %arg7: memref<1x8x128xf32, #tpu.memory_space<vmem>>) attributes {dimension_semantics = [#tpu.dimension_semantics<parallel>], iteration_bounds = array<i64: 4>, scalar_prefetch = 0 : i64, scratch_operands = 0 : i64, tpu.core_type = #tpu.core_type<tc>, window_params = [{transform_indices = @transform_0, window_bounds = array<i64: 1, 48, 8>}, {transform_indices = @transform_1, window_bounds = array<i64: 1, 48, 16>}, {transform_indices = @transform_2, window_bounds = array<i64: 1, 16, 32>}, {pipeline_mode = #tpu.pipeline_mode<synchronous>, transform_indices = @transform_3, window_bounds = array<i64: 184, 32>}, {pipeline_mode = #tpu.pipeline_mode<synchronous>, transform_indices = @transform_4, window_bounds = array<i64: 40, 256>}, {pipeline_mode = #tpu.pipeline_mode<synchronous>, transform_indices = @transform_5, window_bounds = array<i64: 264, 128>}, {transform_indices = @transform_6, window_bounds = array<i64: 1, 8, 128>}]} {
    %c0 = arith.constant 0 : index
    %c0_0 = arith.constant 0 : index
    %0 = vector.load %arg4[%c0, %c0_0] : memref<184x32xf32, #tpu.memory_space<vmem>>, vector<8x32xf32>
    %c8 = arith.constant 8 : index
    %c0_1 = arith.constant 0 : index
    %1 = vector.load %arg4[%c8, %c0_1] : memref<184x32xf32, #tpu.memory_space<vmem>>, vector<8x32xf32>
    %c16 = arith.constant 16 : index
    %c0_2 = arith.constant 0 : index
    %2 = vector.load %arg4[%c16, %c0_2] : memref<184x32xf32, #tpu.memory_space<vmem>>, vector<32x32xf32>
    %c48 = arith.constant 48 : index
    %c0_3 = arith.constant 0 : index
    %3 = vector.load %arg4[%c48, %c0_3] : memref<184x32xf32, #tpu.memory_space<vmem>>, vector<64x32xf32>
    %c112 = arith.constant 112 : index
    %c0_4 = arith.constant 0 : index
    %4 = vector.load %arg4[%c112, %c0_4] : memref<184x32xf32, #tpu.memory_space<vmem>>, vector<32x32xf32>
    %c144 = arith.constant 144 : index
    %c0_5 = arith.constant 0 : index
    %5 = vector.load %arg4[%c144, %c0_5] : memref<184x32xf32, #tpu.memory_space<vmem>>, vector<32x32xf32>
    %c176 = arith.constant 176 : index
    %c0_6 = arith.constant 0 : index
    %6 = vector.load %arg4[%c176, %c0_6] : memref<184x32xf32, #tpu.memory_space<vmem>>, vector<8x32xf32>
    %c0_7 = arith.constant 0 : index
    %c0_8 = arith.constant 0 : index
    %7 = vector.load %arg5[%c0_7, %c0_8] : memref<40x256xf32, #tpu.memory_space<vmem>>, vector<32x256xf32>
    %c32 = arith.constant 32 : index
    %c0_9 = arith.constant 0 : index
    %8 = vector.load %arg5[%c32, %c0_9] : memref<40x256xf32, #tpu.memory_space<vmem>>, vector<8x256xf32>
    %c0_10 = arith.constant 0 : index
    %c0_11 = arith.constant 0 : index
    %9 = vector.load %arg6[%c0_10, %c0_11] : memref<264x128xf32, #tpu.memory_space<vmem>>, vector<256x128xf32>
    %c256 = arith.constant 256 : index
    %c0_12 = arith.constant 0 : index
    %10 = vector.load %arg6[%c256, %c0_12] : memref<264x128xf32, #tpu.memory_space<vmem>>, vector<8x128xf32>
    %c0_13 = arith.constant 0 : index
    %c0_14 = arith.constant 0 : index
    %c0_15 = arith.constant 0 : index
    %11 = vector.load %arg1[%c0_13, %c0_14, %c0_15] : memref<1x48x8xf32, #tpu.memory_space<vmem>>, vector<1x16x8xf32>
    %12 = vector.shape_cast %11 : vector<1x16x8xf32> to vector<16x8xf32>
    %cst = arith.constant dense<0.000000e+00> : vector<16x32xf32>
    %13 = tpu.matmul %12, %0, %cst {dimension_numbers = #tpu.dot_dimension_numbers<[1], [0], [0], [1], [0, 0, 1, 1], [], []>} : vector<16x8xf32>, vector<8x32xf32>, vector<16x32xf32> -> vector<16x32xf32>
    %cst_16 = arith.constant 0.000000e+00 : f32
    %14 = vector.broadcast %cst_16 : f32 to vector<16x32xf32>
    %15 = arith.maximumf %13, %14 : vector<16x32xf32>
    %c0_17 = arith.constant 0 : index
    %c16_18 = arith.constant 16 : index
    %c0_19 = arith.constant 0 : index
    %16 = vector.load %arg1[%c0_17, %c16_18, %c0_19] : memref<1x48x8xf32, #tpu.memory_space<vmem>>, vector<1x32x8xf32>
    %17 = vector.shape_cast %16 : vector<1x32x8xf32> to vector<32x8xf32>
    %cst_20 = arith.constant dense<0.000000e+00> : vector<32x32xf32>
    %18 = tpu.matmul %17, %1, %cst_20 {dimension_numbers = #tpu.dot_dimension_numbers<[1], [0], [0], [1], [0, 0, 1, 1], [], []>} : vector<32x8xf32>, vector<8x32xf32>, vector<32x32xf32> -> vector<32x32xf32>
    %c0_21 = arith.constant 0 : index
    %c0_22 = arith.constant 0 : index
    %c0_23 = arith.constant 0 : index
    %19 = vector.load %arg2[%c0_21, %c0_22, %c0_23] : memref<1x48x16xbf16, #tpu.memory_space<vmem>>, vector<1x32x16xbf16>
    %20 = vector.shape_cast %19 : vector<1x32x16xbf16> to vector<32x16xbf16>
    %c0_24 = arith.constant 0 : index
    %c0_25 = arith.constant 0 : index
    %c0_26 = arith.constant 0 : index
    %21 = vector.load %arg3[%c0_24, %c0_25, %c0_26] : memref<1x16x32xbf16, #tpu.memory_space<vmem>>, vector<1x16x32xbf16>
    %22 = vector.shape_cast %21 : vector<1x16x32xbf16> to vector<16x32xbf16>
    %cst_27 = arith.constant dense<0.000000e+00> : vector<16x32xf32>
    %23 = tpu.matmul %15, %2, %cst_27 {dimension_numbers = #tpu.dot_dimension_numbers<[1], [0], [0], [1], [0, 0, 1, 1], [], []>} : vector<16x32xf32>, vector<32x32xf32>, vector<16x32xf32> -> vector<16x32xf32>
    %24 = arith.truncf %23 : vector<16x32xf32> to vector<16x32xbf16>
    %cst_28 = arith.constant dense<0.000000e+00> : vector<32x32xf32>
    %25 = tpu.matmul %20, %24, %cst_28 {dimension_numbers = #tpu.dot_dimension_numbers<[1], [0], [0], [1], [0, 0, 1, 1], [], []>} : vector<32x16xbf16>, vector<16x32xbf16>, vector<32x32xf32> -> vector<32x32xf32>
    %26 = arith.addf %25, %18 : vector<32x32xf32>
    %cst_29 = arith.constant 0.000000e+00 : f32
    %27 = vector.broadcast %cst_29 : f32 to vector<32x32xf32>
    %28 = arith.maximumf %26, %27 : vector<32x32xf32>
    %29 = arith.truncf %28 : vector<32x32xf32> to vector<32x32xbf16>
    %cst_30 = arith.constant dense<0.000000e+00> : vector<16x32xf32>
    %30 = tpu.matmul %22, %29, %cst_30 {dimension_numbers = #tpu.dot_dimension_numbers<[1], [0], [0], [1], [0, 0, 1, 1], [], []>} : vector<16x32xbf16>, vector<32x32xbf16>, vector<16x32xf32> -> vector<16x32xf32>
    %31 = tpu.concatenate %30, %15 in 1 : vector<16x32xf32>, vector<16x32xf32> -> vector<16x64xf32>
    %cst_31 = arith.constant dense<0.000000e+00> : vector<16x32xf32>
    %32 = tpu.matmul %31, %3, %cst_31 {dimension_numbers = #tpu.dot_dimension_numbers<[1], [0], [0], [1], [0, 0, 1, 1], [], []>} : vector<16x64xf32>, vector<64x32xf32>, vector<16x32xf32> -> vector<16x32xf32>
    %cst_32 = arith.constant 0.000000e+00 : f32
    %33 = vector.broadcast %cst_32 : f32 to vector<16x32xf32>
    %34 = arith.maximumf %32, %33 : vector<16x32xf32>
    %cst_33 = arith.constant dense<0.000000e+00> : vector<16x32xf32>
    %35 = tpu.matmul %34, %2, %cst_33 {dimension_numbers = #tpu.dot_dimension_numbers<[1], [0], [0], [1], [0, 0, 1, 1], [], []>} : vector<16x32xf32>, vector<32x32xf32>, vector<16x32xf32> -> vector<16x32xf32>
    %36 = arith.truncf %35 : vector<16x32xf32> to vector<16x32xbf16>
    %cst_34 = arith.constant dense<0.000000e+00> : vector<32x32xf32>
    %37 = tpu.matmul %20, %36, %cst_34 {dimension_numbers = #tpu.dot_dimension_numbers<[1], [0], [0], [1], [0, 0, 1, 1], [], []>} : vector<32x16xbf16>, vector<16x32xbf16>, vector<32x32xf32> -> vector<32x32xf32>
    %38 = arith.addf %37, %18 : vector<32x32xf32>
    %cst_35 = arith.constant 0.000000e+00 : f32
    %39 = vector.broadcast %cst_35 : f32 to vector<32x32xf32>
    %40 = arith.maximumf %38, %39 : vector<32x32xf32>
    %41 = arith.truncf %40 : vector<32x32xf32> to vector<32x32xbf16>
    %cst_36 = arith.constant dense<0.000000e+00> : vector<16x32xf32>
    %42 = tpu.matmul %22, %41, %cst_36 {dimension_numbers = #tpu.dot_dimension_numbers<[1], [0], [0], [1], [0, 0, 1, 1], [], []>} : vector<16x32xbf16>, vector<32x32xbf16>, vector<16x32xf32> -> vector<16x32xf32>
    %43 = tpu.concatenate %42, %34 in 1 : vector<16x32xf32>, vector<16x32xf32> -> vector<16x64xf32>
    %cst_37 = arith.constant dense<0.000000e+00> : vector<16x32xf32>
    %44 = tpu.matmul %43, %3, %cst_37 {dimension_numbers = #tpu.dot_dimension_numbers<[1], [0], [0], [1], [0, 0, 1, 1], [], []>} : vector<16x64xf32>, vector<64x32xf32>, vector<16x32xf32> -> vector<16x32xf32>
    %cst_38 = arith.constant 0.000000e+00 : f32
    %45 = vector.broadcast %cst_38 : f32 to vector<16x32xf32>
    %46 = arith.maximumf %44, %45 : vector<16x32xf32>
    %cst_39 = arith.constant dense<0.000000e+00> : vector<16x32xf32>
    %47 = tpu.matmul %46, %2, %cst_39 {dimension_numbers = #tpu.dot_dimension_numbers<[1], [0], [0], [1], [0, 0, 1, 1], [], []>} : vector<16x32xf32>, vector<32x32xf32>, vector<16x32xf32> -> vector<16x32xf32>
    %48 = arith.truncf %47 : vector<16x32xf32> to vector<16x32xbf16>
    %cst_40 = arith.constant dense<0.000000e+00> : vector<32x32xf32>
    %49 = tpu.matmul %20, %48, %cst_40 {dimension_numbers = #tpu.dot_dimension_numbers<[1], [0], [0], [1], [0, 0, 1, 1], [], []>} : vector<32x16xbf16>, vector<16x32xbf16>, vector<32x32xf32> -> vector<32x32xf32>
    %50 = arith.addf %49, %18 : vector<32x32xf32>
    %cst_41 = arith.constant 0.000000e+00 : f32
    %51 = vector.broadcast %cst_41 : f32 to vector<32x32xf32>
    %52 = arith.maximumf %50, %51 : vector<32x32xf32>
    %53 = arith.truncf %52 : vector<32x32xf32> to vector<32x32xbf16>
    %cst_42 = arith.constant dense<0.000000e+00> : vector<16x32xf32>
    %54 = tpu.matmul %22, %53, %cst_42 {dimension_numbers = #tpu.dot_dimension_numbers<[1], [0], [0], [1], [0, 0, 1, 1], [], []>} : vector<16x32xbf16>, vector<32x32xbf16>, vector<16x32xf32> -> vector<16x32xf32>
    %55 = tpu.concatenate %54, %46 in 1 : vector<16x32xf32>, vector<16x32xf32> -> vector<16x64xf32>
    %cst_43 = arith.constant dense<0.000000e+00> : vector<16x32xf32>
    %56 = tpu.matmul %55, %3, %cst_43 {dimension_numbers = #tpu.dot_dimension_numbers<[1], [0], [0], [1], [0, 0, 1, 1], [], []>} : vector<16x64xf32>, vector<64x32xf32>, vector<16x32xf32> -> vector<16x32xf32>
    %cst_44 = arith.constant 0.000000e+00 : f32
    %57 = vector.broadcast %cst_44 : f32 to vector<16x32xf32>
    %58 = arith.maximumf %56, %57 : vector<16x32xf32>
    %c0_45 = arith.constant 0 : index
    %c32_46 = arith.constant 32 : index
    %c0_47 = arith.constant 0 : index
    %59 = vector.load %arg2[%c0_45, %c32_46, %c0_47] : memref<1x48x16xbf16, #tpu.memory_space<vmem>>, vector<1x16x16xbf16>
    %60 = vector.shape_cast %59 : vector<1x16x16xbf16> to vector<16x16xbf16>
    %61 = arith.truncf %58 : vector<16x32xf32> to vector<16x32xbf16>
    %cst_48 = arith.constant dense<0.000000e+00> : vector<16x32xf32>
    %62 = tpu.matmul %60, %61, %cst_48 {dimension_numbers = #tpu.dot_dimension_numbers<[1], [0], [0], [1], [0, 0, 1, 1], [], []>} : vector<16x16xbf16>, vector<16x32xbf16>, vector<16x32xf32> -> vector<16x32xf32>
    %63 = vector.extract_strided_slice %62 {offsets = [0, 0], sizes = [8, 32], strides = [1, 1]} : vector<16x32xf32> to vector<8x32xf32>
    %64 = vector.extract_strided_slice %62 {offsets = [8, 0], sizes = [8, 32], strides = [1, 1]} : vector<16x32xf32> to vector<8x32xf32>
    %cst_49 = arith.constant dense<0.000000e+00> : vector<8x32xf32>
    %65 = tpu.matmul %63, %4, %cst_49 {dimension_numbers = #tpu.dot_dimension_numbers<[1], [0], [0], [1], [0, 0, 1, 1], [], []>} : vector<8x32xf32>, vector<32x32xf32>, vector<8x32xf32> -> vector<8x32xf32>
    %cst_50 = arith.constant dense<0.000000e+00> : vector<8x32xf32>
    %66 = tpu.matmul %64, %5, %cst_50 {dimension_numbers = #tpu.dot_dimension_numbers<[1], [0], [0], [1], [0, 0, 1, 1], [], []>} : vector<8x32xf32>, vector<32x32xf32>, vector<8x32xf32> -> vector<8x32xf32>
    %67 = arith.addf %65, %66 : vector<8x32xf32>
    %68 = arith.addf %67, %6 : vector<8x32xf32>
    %cst_51 = arith.constant 0.000000e+00 : f32
    %69 = vector.broadcast %cst_51 : f32 to vector<8x32xf32>
    %70 = arith.maximumf %68, %69 : vector<8x32xf32>
    %cst_52 = arith.constant dense<0.000000e+00> : vector<8x256xf32>
    %71 = tpu.matmul %70, %7, %cst_52 {dimension_numbers = #tpu.dot_dimension_numbers<[1], [0], [0], [1], [0, 0, 1, 1], [], []>} : vector<8x32xf32>, vector<32x256xf32>, vector<8x256xf32> -> vector<8x256xf32>
    %72 = arith.addf %71, %8 : vector<8x256xf32>
    %cst_53 = arith.constant dense<0.000000e+00> : vector<8x128xf32>
    %73 = tpu.matmul %72, %9, %cst_53 {dimension_numbers = #tpu.dot_dimension_numbers<[1], [0], [0], [1], [0, 0, 1, 1], [], []>} : vector<8x256xf32>, vector<256x128xf32>, vector<8x128xf32> -> vector<8x128xf32>
    %74 = arith.addf %73, %10 : vector<8x128xf32>
    %75 = vector.extract_strided_slice %74 {offsets = [0, 0], sizes = [8, 1], strides = [1, 1]} : vector<8x128xf32> to vector<8x1xf32>
    %76 = vector.extract_strided_slice %74 {offsets = [0, 1], sizes = [8, 1], strides = [1, 1]} : vector<8x128xf32> to vector<8x1xf32>
    %77 = tpu.iota {dimensions = array<i32: 0>} : vector<8x1xi32>
    %c2_i32 = arith.constant 2 : i32
    %78 = vector.broadcast %c2_i32 : i32 to vector<8x1xi32>
    %79 = arith.cmpi slt, %77, %78 : vector<8x1xi32>
    %80 = arith.extui %79 : vector<8x1xi1> to vector<8x1xi32>
    %81 = arith.sitofp %80 : vector<8x1xi32> to vector<8x1xf32>
    %82 = arith.mulf %76, %81 : vector<8x1xf32>
    %83 = vector.shape_cast %82 : vector<8x1xf32> to vector<1x8x1xf32>
    %cst_54 = arith.constant dense<0.000000e+00> : vector<1xf32>
    %84 = vector.multi_reduction <add>, %83, %cst_54 [1, 2] : vector<1x8x1xf32> to vector<1xf32>
    %85 = vector.shape_cast %84 : vector<1xf32> to vector<1x1x1xf32>
    %86 = vector.extract %85[0, 0, 0] : f32 from vector<1x1x1xf32>
    %cst_55 = arith.constant 5.000000e-01 : f32
    %87 = arith.mulf %86, %cst_55 : f32
    %88 = arith.addf %75, %76 : vector<8x1xf32>
    %89 = vector.broadcast %87 : f32 to vector<8x1xf32>
    %90 = arith.subf %88, %89 : vector<8x1xf32>
    %91 = vector.shape_cast %90 : vector<8x1xf32> to vector<8x1xf32>
    %92 = vector.broadcast %91 : vector<8x1xf32> to vector<8x128xf32>
    %c0_56 = arith.constant 0 : index
    %c0_57 = arith.constant 0 : index
    %c0_58 = arith.constant 0 : index
    %93 = vector.load %arg7[%c0_56, %c0_57, %c0_58] : memref<1x8x128xf32, #tpu.memory_space<vmem>>, vector<1x8x128xf32>
    %94 = vector.shape_cast %93 : vector<1x8x128xf32> to vector<8x128xf32>
    %95 = vector.shape_cast %92 : vector<8x128xf32> to vector<1x8x128xf32>
    tpu.vector_store %arg7[%c0_56, %c0_57, %c0_58], %95 {strides = array<i32>} : memref<1x8x128xf32, #tpu.memory_space<vmem>>, vector<1x8x128xf32>,
    return
  }
  func.func @transform_0(%arg0: i32) -> (i32, i32, i32) {
    %c0_i32 = arith.constant 0 : i32
    %c0_i32_0 = arith.constant 0 : i32
    %c0_i32_1 = arith.constant 0 : i32
    return %arg0, %c0_i32, %c0_i32_0 : i32, i32, i32
  }
  func.func @transform_1(%arg0: i32) -> (i32, i32, i32) {
    %c0_i32 = arith.constant 0 : i32
    %c0_i32_0 = arith.constant 0 : i32
    %c0_i32_1 = arith.constant 0 : i32
    return %arg0, %c0_i32, %c0_i32_0 : i32, i32, i32
  }
  func.func @transform_2(%arg0: i32) -> (i32, i32, i32) {
    %c0_i32 = arith.constant 0 : i32
    %c0_i32_0 = arith.constant 0 : i32
    %c0_i32_1 = arith.constant 0 : i32
    return %arg0, %c0_i32, %c0_i32_0 : i32, i32, i32
  }
  func.func @transform_3(%arg0: i32) -> (i32, i32) {
    %c0_i32 = arith.constant 0 : i32
    %c0_i32_0 = arith.constant 0 : i32
    %c0_i32_1 = arith.constant 0 : i32
    return %c0_i32, %c0_i32_0 : i32, i32
  }
  func.func @transform_4(%arg0: i32) -> (i32, i32) {
    %c0_i32 = arith.constant 0 : i32
    %c0_i32_0 = arith.constant 0 : i32
    %c0_i32_1 = arith.constant 0 : i32
    return %c0_i32, %c0_i32_0 : i32, i32
  }
  func.func @transform_5(%arg0: i32) -> (i32, i32) {
    %c0_i32 = arith.constant 0 : i32
    %c0_i32_0 = arith.constant 0 : i32
    %c0_i32_1 = arith.constant 0 : i32
    return %c0_i32, %c0_i32_0 : i32, i32
  }
  func.func @transform_6(%arg0: i32) -> (i32, i32, i32) {
    %c0_i32 = arith.constant 0 : i32
    %c0_i32_0 = arith.constant 0 : i32
    %c0_i32_1 = arith.constant 0 : i32
    return %arg0, %c0_i32, %c0_i32_0 : i32, i32, i32
  }
}

</mosaic_0001>

<bundles_post_ra>
// kernel: tpu_custom_call.1
= control target key start
LH: loop header
LB: loop body
LE: loop exit
PB: predicated region body
PF: predicated region fallthrough
CT: control target
= control target key end

     0   :  { %11 = vsyncpa [#allocation3], 0  ;;  %s2952_s0 = inlined_call_operand.vmem [shape: f32[4,48,8], index: 0, kind: input, shape index: {}]   ;;  %s2953_s1 = inlined_call_operand.vmem [shape: bf16[4,48,16], index: 1, kind: input, shape index: {}]   ;;  %s2954_s2 = inlined_call_operand.vmem [shape: bf16[4,16,32], index: 2, kind: input, shape index: {}]   ;;  %s2955_s3 = inlined_call_operand.vmem [shape: f32[184,32], index: 3, kind: input, shape index: {}]   ;;  %s2956_s4 = inlined_call_operand.vmem [shape: f32[40,256], index: 4, kind: input, shape index: {}]   ;;  %s2957_s5 = inlined_call_operand.vmem [shape: f32[264,128], index: 5, kind: input, shape index: {}]   ;;  %s2958_s6 = inlined_call_operand.hbm [shape: f32[4,8,128], index: 6, kind: output, shape index: {}]  }
   0x1   :  { %13 = vsyncpa [#allocation3 + $0x1], 0  ;;  %s2488_s21 = smov 0   ;;  %s2490_s22 = smov 0  }
   0x2   :  { %s2492_s23 = smov 0   ;;  %s2494_s24 = smov 0  }
   0x3 LB: > { %s2509_s25 = sadd.s32 4294967295, %s2444_s24   ;;  %s1860_s26 = sadd.s32 4294967294, %s2444_s24   ;;  %s2444_s24 = sphi %s2494_s24, %s2964_s24   ;;  %s2440_s23 = sphi %s2492_s23, %s2963_s23   ;;  %s2436_s22 = sphi %s2490_s22, %s2962_s22   ;;  %s2432_s21 = sphi %s2488_s21, %s2961_s21  }
   0x4   : > { %s2513_s27 = sadd.s32 1, %s2444_s24   ;;  %s167_s28 = sadd.s32 1, %s2440_s23 }
   0x5   : > { %s164_s29 = ssub.s32 %s2444_s24, %s2513_s27  ;;  %p177_p0 = scmp.ne.s32.totalorder %s2440_s23, %s2436_s22 }
   0x6   : > { %p165_p1 = scmp.eq.s32.totalorder %s164_s29, 0  ;;  %p178_p2 = scmp.eq.s32.totalorder %s2509_s25, 3 }
   0x7   : > { %p183_p3 = scmp.ne.s32.totalorder %s2436_s22, %s2432_s21  ;;  %p184_p4 = scmp.eq.s32.totalorder %s1860_s26, 3 }
   0x8   : > { %s2524_s30 = scalar_select %p165_p1, %s2440_s23, %s167_s28  }
   0x9   : > { %p2526_p5 = por %p178_p2, %p177_p0  ;;  %p2530_p6 = por %p184_p4, %p183_p3 }
   0xa   : > { %p1863_p7 = scmp.ge.s32.totalorder %s2444_s24, 1  ;;  %p235_p8 = scmp.lt.s32.totalorder %s2444_s24, 5 }
   0xc   : > { %p236_p9 = pnand %p1863_p7, %p235_p8 }
   0xd   : > { %v291_v0 = vld [vmem:[%s2955_s3] sm:$0xff] (!%p236_p9)  ;;  %p275_p10 = scmp.lt.s32.totalorder (!%p236_p9), %s2509_s25, 3  ;;  %v293_v1 = vld [vmem:[%s2955_s3 + $0x10] sm:$0xff] (!%p236_p9)  ;;  %v294_v2 = vld [vmem:[%s2955_s3 + $0x18] sm:$0xff] (!%p236_p9)  ;;  %vm359_vm0 = vcmask (!%p236_p9), 64512   ;;  %vm550_vm1 = vcmask (!%p236_p9), 261120  }
   0xe   : > { %239 = sbr.rel (%p236_p9) target bundleno = 4216 (0x1078), region = 44  ;;  %2031 = vmatprep.subr.mxu0 (!%p236_p9), %v291_v0  ;;  %v2546_v3 = vpack.c.bf16 (!%p236_p9), %v294_v2, %v293_v1  ;;  %v295_v6 = vld [vmem:[%s2955_s3 + $0x20] sm:$0xff] (!%p236_p9)  ;;  %v296_v7 = vld [vmem:[%s2955_s3 + $0x28] sm:$0xff] (!%p236_p9)  ;;  %s2446_s11 = smov (!%p236_p9), 32   ;;  %vm643_vm2 = vcmask (!%p236_p9), 130048   ;;  %v2447_v27 = vmov (!%p236_p9), 0.0  }
   0xf   : > { %2032 = vmatpush3.msra.mxu0 (!%p236_p9), %v291_v0  ;;  %v2565_v8 = vpack.c.bf16 (!%p236_p9), %v296_v7, %v295_v6  ;;  %v292_v9 = vld [vmem:[%s2955_s3 + $0x8] sm:$0xff] (!%p236_p9)  ;;  %vm2448_vm3 = vmmov (!%p236_p9), 0   ;;  %v297_v28 = vld [vmem:[%s2955_s3 + $0x30] sm:$0xff] (!%p236_p9)  ;;  %v298_v29 = vld [vmem:[%s2955_s3 + $0x38] sm:$0xff] (!%p236_p9)  ;;  %vm762_vm4 = vcmask (!%p236_p9), 523264   ;;  %s2450_s9 = smov (!%p236_p9), 127  }
  0x10   : > { %2205 = vmatprep.subr.bf16.mxu0 (!%p236_p9), %v2546_v3  ;;  %2036 = vmatprep.subr.mxu1 (!%p236_p9), %v292_v9  ;;  %v299_v30 = vld [vmem:[%s2955_s3 + $0x40] sm:$0xff] (!%p236_p9)  ;;  %v2622_v31 = vpack.c.bf16 (!%p236_p9), %v298_v29, %v297_v28  ;;  %v300_v32 = vld [vmem:[%s2955_s3 + $0x48] sm:$0xff] (!%p236_p9)  ;;  %v301_v34 = vld [vmem:[%s2955_s3 + $0x50] sm:$0xff] (!%p236_p9)  ;;  %vm1738_vm6 = vcmask (!%p236_p9), 7168   ;;  %s272_s10 = sand.u32 (!%p236_p9), 1, %s2436_s22   ;;  %s1906_s14 = sshll.u32 (!%p236_p9), %s2509_s25, 7 }
  0x11   : > { %2037 = vmatpush3.msra.mxu1 (!%p236_p9), %v292_v9  ;;  %v2627_v33 = vpack.c.bf16 (!%p236_p9), %v300_v32, %v299_v30  ;;  %v302_v35 = vld [vmem:[%s2955_s3 + $0x58] sm:$0xff] (!%p236_p9)  ;;  %v303_v52 = vld [vmem:[%s2955_s3 + $0x60] sm:$0xff] (!%p236_p9)  ;;  %v304_v53 = vld [vmem:[%s2955_s3 + $0x68] sm:$0xff] (!%p236_p9)  ;;  %s1764_s26 = scalar_lea.sflag (!%p236_p9), [#allocation3], %s272_s10 }
  0x12   : > { %v2638_v36 = vpack.c.bf16 (!%p236_p9), %v302_v35, %v301_v34  ;;  %v2663_v54 = vpack.c.bf16 (!%p236_p9), %v304_v53, %v303_v52 }
  0x15   : > { %s2549_s15 = scalar_select %p275_p10, %s2509_s25, 3 }
  0x17   : > { %s2328_s16 = smul.u32 48, %s2549_s15  ;;  %s1909_s17 = sshll.u32 %s2549_s15, 3 }
  0x18   : > { %s2329_s12 = smul.u32 24, %s2549_s15  ;;  %s2609_s20 = scalar_lea.vmem %s2954_s2, %s1909_s17 }
  0x19   : > { %s279_s19 = scalar_lea.vmem %s2952_s0, %s2328_s16  ;;  %v2649_v51 = vld [vmem:[%s2609_s20] sm:$0xff]  }
  0x1a   : > { %v357_v4 = vld [vmem:[%s279_s19] sm:$0xff]  ;;  %v358_v5 = vld [vmem:[%s279_s19 + $0x8] sm:$0xff]  ;;  %v443_v10 = vld [vmem:[%s279_s19 + $0x10] sm:$0xff]  ;;  %s2584_s16 = scalar_lea.vmem %s2953_s1, %s2329_s12  ;;  %s1864_s12 = sshll.u32 %s272_s10, 3 }
  0x1b   : > { %2033 = vmatprep.mubr.msk.f32.mxu0 %vm359_vm0, %v357_v4  ;;  %v444_v11 = vld [vmem:[%s279_s19 + $0x18] sm:$0xff]  ;;  %2038 = vmatprep.mubr.msk.f32.mxu1 %vm359_vm0, %v443_v10  ;;  %v445_v16 = vld [vmem:[%s279_s19 + $0x20] sm:$0xff]  ;;  %v446_v17 = vld [vmem:[%s279_s19 + $0x28] sm:$0xff]  ;;  %s274_s15 = scalar_lea.vmem [#allocation2], %s1864_s12  ;;  %s2912_s19 = scalar_lea.hbm %s2958_s6, %s1906_s14 }
  0x1c   : > { %2034 = vmatmul.mubr.msk.f32.vlgmr.msra.gmra.mrb[0].mxu0 %vm359_vm0, %v358_v5  ;;  %2039 = vmatmul.mubr.msk.f32.vlgmr.msra.gmra.mrb[0].mxu1 %vm359_vm0, %v444_v11  ;;  %v2587_v18 = vld [vmem:[%s2584_s16] sm:$0xff]   ;;  %v2596_v24 = vld [vmem:[%s2584_s16 + $0x8] sm:$0xff]   ;;  %s1777_s13 = sshll.u32 %s274_s15, 4  ;;  %s2907_s13 = int_to_ptr.vmem [resolvable:$true] %s1777_s13 }
  0x1d   : > { %2207 = vmatpush3.bf16.msra.mxu0 %v2546_v3  ;;  %2041 = vmatprep.mubr.msk.f32.mxu1 %vm359_vm0, %v445_v16  ;;  %s2382_s28 = scalar_lea.vmem %s2907_s13, 128 }
  0x1e   : > { %2209 = vmatprep.subr.bf16.mxu0 %v2565_v8  ;;  %p2383_p11 = scmp.ne.s32.totalorder %s2907_s13, %s2382_s28 }
  0x20   : > { %2042 = vmatmul.mubr.msk.f32.gmra.mrb[2].mxu1 %vm359_vm0, %v446_v17  ;;  %p2384_p12 = pnand %p2383_p11, %p2526_p5 }
  0x21   : > { %2211 = vmatpush3.bf16.msra.mxu0 %v2565_v8  ;;  %2057 = vmatprep.mubr.msk.bf16.mxu1 %vm643_vm2, %v2587_v18 }
  0x22   : > { %2061 = vmatprep.subr.bf16.mxu0 %v2447_v27  ;;  %p2385_p13 = pneg %p2384_p12 }
  0xef   : > { %v2035_v12 = vpop.f32.mrb[0].mxu0  ;;  %v2591_v19 = vpop.f32.mrb[0].mxu1 }
  0xf0   : > { %v432_v13 = vpop.f32.mrb[1].mxu0  ;;  %v442_v15 = vmax.f32 %v2035_v12, 0.0  ;;  %v2593_v20 = vpop.f32.mrb[1].mxu1 }
  0xf1   : > { %v441_v14 = vmax.f32 %v432_v13, 0.0 }
  0xf3   : > { %754 = vrot.lane.b32.xlu0 %v441_v14, %s2446_s11  ;;  %2052 = vmatprep.mubr.msk.f32.mxu0 %vm550_vm1, %v441_v14  ;;  %v2600_v25 = vpop.f32.mrb[2].mxu1 }
  0xf4   : > { %2053 = vmatmul.mubr.msk.f32.vlgmr.msra.gmra.mrb[2].mxu0 %vm550_vm1, %v442_v15  ;;  %v2602_v26 = vpop.f32.mrb[3].mxu1 }
  0xf5   : > { %2065 = vmatprep.mubr.msk.bf16.mxu0 %vm2448_vm3, %v2447_v27 }
  0xf7   : > { %756 = vrot.lane.b32.xlu0 %v442_v15, %s2446_s11 }
 0x165   : > { %v755_v55 = vpop.permute.xlu0 %754 }
 0x169   : > { %v757_v59 = vpop.permute.xlu0 %756 }
 0x1c7   : > { %v2054_v21 = vpop.f32.mrb[2].mxu0 }
 0x1c8   : > { %v623_v22 = vpop.f32.mrb[3].mxu0 }
 0x1c9   : > { %v632_v23 = vpack.c.bf16 %v2054_v21, %v623_v22 }
 0x1cb   : > { %2055 = vmatprep.subr.bf16.mxu1 %v632_v23 }
 0x1cc   : > { %2056 = vmatpush3.bf16.msra.mxu1 %v632_v23 }
 0x1cd   : > { %2213 = vmatprep.subr.bf16.mxu1 %v2622_v31 }
 0x1cf   : > { %2058 = vmatmul.mubr.msk.bf16.vlgmr.msra.gmra.mrb[4].mxu1 %vm643_vm2, %v2596_v24 }
 0x1d0   : > { %2215 = vmatpush3.bf16.msra.mxu1 %v2622_v31 }
 0x1d1   : > { %2217 = vmatprep.subr.bf16.mxu1 %v2627_v33 }
 0x1d4   : > { %2219 = vmatpush3.bf16.msra.mxu1 %v2627_v33 }
 0x1d5   : > { %2221 = vmatprep.subr.bf16.mxu1 %v2638_v36 }
 0x1d8   : > { %2223 = vmatpush3.bf16.msra.mxu1 %v2638_v36 }
 0x1d9   : > { %2225 = vmatprep.subr.bf16.mxu1 %v2663_v54 }
 0x1dc   : > { %2227 = vmatpush3.bf16.msra.mxu1 %v2663_v54 }
 0x1dd   : > { %2105 = vmatprep.subr.bf16.mxu1 %v2447_v27 }
 0x2a2   : > { %v2059_v37 = vpop.f32.mrb[4].mxu1 }
 0x2a3   : > { %v693_v38 = vadd.f32 %v2059_v37, %v2602_v26  ;;  %v684_v39 = vpop.f32.mrb[5].mxu1 }
 0x2a4   : > { %v685_v40 = vadd.f32 %v684_v39, %v2593_v20  ;;  %v2060_v41 = vpop.f32.mrb[6].mxu1 }
 0x2a5   : > { %v696_v42 = vadd.f32 %v2060_v41, %v2600_v25  ;;  %v687_v43 = vpop.f32.mrb[7].mxu1  ;;  %v701_v45 = vmax.f32 %v693_v38, 0.0 }
 0x2a6   : > { %v688_v44 = vadd.f32 %v2591_v19, %v687_v43  ;;  %v699_v47 = vmax.f32 %v685_v40, 0.0 }
 0x2a7   : > { %v702_v46 = vmax.f32 %v696_v42, 0.0 }
 0x2a8   : > { %v700_v48 = vmax.f32 %v688_v44, 0.0 }
 0x2a9   : > { %v704_v49 = vpack.c.bf16 %v702_v46, %v701_v45 }
 0x2aa   : > { %v703_v50 = vpack.c.bf16 %v700_v48, %v699_v47 }
 0x2ac   : > { %2062 = vmatpush3.bf16.msra.mxu0 %v703_v50 }
 0x2ad   : > { %2063 = vmatprep.subr.bf16.mxu0 %v2447_v27 }
 0x2b0   : > { %2064 = vmatpush3.bf16.msra.mxu0 %v704_v49 }
 0x2b1   : > { %2229 = vmatprep.subr.bf16.mxu0 %v2546_v3 }
 0x2b3   : > { %2066 = vmatmul.mubr.msk.bf16.vlgmr.msra.gmra.mrb[4].mxu0 %vm550_vm1, %v2649_v51 }
 0x2b4   : > { %2231 = vmatpush3.bf16.msra.mxu0 %v2546_v3 }
 0x2b5   : > { %2233 = vmatprep.subr.bf16.mxu0 %v2565_v8 }
 0x2b8   : > { %2235 = vmatpush3.bf16.msra.mxu0 %v2565_v8 }
 0x386   : > { %v747_v56 = vpop.f32.mrb[4].mxu0 }
 0x387   : > { %v760_v57 = vsel %vm550_vm1, %v747_v56, %v755_v55  ;;  %v2067_v58 = vpop.f32.mrb[5].mxu0 }
 0x388   : > { %v750_v60 = vpop.f32.mrb[6].mxu0  ;;  %2085 = vmatprep.mubr.msk.f32.mxu1 %vm762_vm4, %v760_v57 }
 0x389   : > { %v761_v61 = vsel %vm550_vm1, %v750_v60, %v757_v59  ;;  %v2068_v62 = vpop.f32.mrb[7].mxu0  ;;  %v306_v60 = vld [vmem:[%s2955_s3 + $0x78] sm:$0xff] }
 0x38a   : > { %2086 = vmatmul.mubr.msk.f32.vlgmr.msra.gmra.mrb[8].mxu1 %vm762_vm4, %v761_v61 }
 0x38b   : > { %2109 = vmatprep.mubr.msk.bf16.mxu1 %vm2448_vm3, %v2447_v27 }
 0x45d   : > { %v2087_v63 = vpop.f32.mrb[8].mxu1 }
 0x45e   : > { %v835_v0 = vpop.f32.mrb[9].mxu1  ;;  %v845_v2 = vmax.f32 %v2087_v63, 0.0 }
 0x45f   : > { %v844_v1 = vmax.f32 %v835_v0, 0.0 }
 0x461   : > { %1024 = vrot.lane.b32.xlu1 %v844_v1, %s2446_s11  ;;  %2096 = vmatprep.mubr.msk.f32.mxu0 %vm550_vm1, %v844_v1 }
 0x462   : > { %2097 = vmatmul.mubr.msk.f32.vlgmr.msra.gmra.mrb[8].mxu0 %vm550_vm1, %v845_v2 }
 0x463   : > { %2101 = vmatprep.mubr.msk.bf16.mxu0 %vm643_vm2, %v2587_v18 }
 0x465   : > { %1026 = vrot.lane.b32.xlu1 %v845_v2, %s2446_s11  ;;  %v309_v2 = vld [vmem:[%s2955_s3 + $0x90] sm:$0xff] }
 0x4d3   : > { %v1025_v29 = vpop.permute.xlu1 %1024 }
 0x4d7   : > { %v1027_v35 = vpop.permute.xlu1 %1026 }
 0x535   : > { %v2098_v4 = vpop.f32.mrb[8].mxu0 }
 0x536   : > { %v918_v5 = vpop.f32.mrb[9].mxu0 }
 0x537   : > { %v927_v6 = vpack.c.bf16 %v2098_v4, %v918_v5  ;;  %v310_v4 = vld [vmem:[%s2955_s3 + $0x98] sm:$0xff] }
 0x539   : > { %2099 = vmatprep.subr.bf16.mxu0 %v927_v6 }
 0x53a   : > { %2100 = vmatpush3.bf16.msra.mxu0 %v927_v6  ;;  %v2381_v6 = vld [vmem:[%s2584_s16 + $0x10] sm:$0xff]   ;;  %s2452_s16 = smov [#allocation2]  }
 0x53b   : > { %2237 = vmatprep.subr.bf16.mxu0 %v2622_v31  ;;  %s2386_s25 = sshll.u32 %s2452_s16, 4  ;;  %s2387_s25 = int_to_ptr.vmem [resolvable:$false] %s2386_s25 }
 0x53c   : > { %s2388_s29 = scalar_lea.vmem %s2387_s25, 256  ;;  %p2389_p0 = scmp.lt.s32.totalorder %s2907_s13, %s2387_s25 }
 0x53d   : > { %2102 = vmatmul.mubr.msk.bf16.vlgmr.msra.gmra.mrb[12].mxu0 %vm643_vm2, %v2596_v24  ;;  %p2390_p1 = scmp.lt.s32.totalorder %s2388_s29, %s2382_s28 }
 0x53e   : > { %2239 = vmatpush3.bf16.msra.mxu0 %v2622_v31 }
 0x53f   : > { %2241 = vmatprep.subr.bf16.mxu0 %v2627_v33  ;;  %p2391_p2 = por %p2390_p1, %p2389_p0 }
 0x541   : > { %p2392_p3 = pnand %p2391_p2, %p2385_p13 }
 0x542   : > { %2243 = vmatpush3.bf16.msra.mxu0 %v2627_v33 }
 0x543   : > { %2245 = vmatprep.subr.bf16.mxu0 %v2638_v36 }
 0x546   : > { %2247 = vmatpush3.bf16.msra.mxu0 %v2638_v36 }
 0x547   : > { %2249 = vmatprep.subr.bf16.mxu0 %v2663_v54 }
 0x54a   : > { %2251 = vmatpush3.bf16.msra.mxu0 %v2663_v54 }
 0x54b   : > { %2149 = vmatprep.subr.bf16.mxu0 %v2447_v27 }
 0x610   : > { %v2103_v7 = vpop.f32.mrb[12].mxu0 }
 0x611   : > { %v971_v9 = vadd.f32 %v2103_v7, %v2602_v26  ;;  %v962_v10 = vpop.f32.mrb[13].mxu0  ;;  %v2277_v7 = vpack.c.bf16 %v310_v4, %v309_v2  ;;  %v353_v2 = vld [vmem:[%s2957_s5 + $0xe8] sm:$0xff] }
 0x612   : > { %v963_v11 = vadd.f32 %v962_v10, %v2593_v20  ;;  %v2104_v12 = vpop.f32.mrb[14].mxu0  ;;  %v308_v10 = vld [vmem:[%s2955_s3 + $0x88] sm:$0xff] }
 0x613   : > { %v974_v13 = vadd.f32 %v2104_v12, %v2600_v25  ;;  %v965_v14 = vpop.f32.mrb[15].mxu0  ;;  %v979_v16 = vmax.f32 %v971_v9, 0.0  ;;  %v307_v9 = vld [vmem:[%s2955_s3 + $0x80] sm:$0xff] }
 0x614   : > { %v966_v15 = vadd.f32 %v2591_v19, %v965_v14  ;;  %v977_v21 = vmax.f32 %v963_v11, 0.0  ;;  %v2286_v11 = vpack.c.bf16 %v308_v10, %v307_v9  ;;  %v311_v12 = vld [vmem:[%s2955_s3 + $0xa0] sm:$0xff] }
 0x615   : > { %v980_v17 = vmax.f32 %v974_v13, 0.0  ;;  %v312_v13 = vld [vmem:[%s2955_s3 + $0xa8] sm:$0xff] }
 0x616   : > { %v978_v22 = vmax.f32 %v966_v15, 0.0  ;;  %v2280_v14 = vpack.c.bf16 %v312_v13, %v311_v12  ;;  %v315_v15 = vld [vmem:[%s2956_s4 + $0x8] sm:$0xff]  ;;  %v313_v13 = vld [vmem:[%s2955_s3 + $0xb0] sm:$0xff] }
 0x617   : > { %v982_v23 = vpack.c.bf16 %v980_v17, %v979_v16  ;;  %v317_v16 = vld [vmem:[%s2956_s4 + $0x18] sm:$0xff] }
 0x618   : > { %v981_v28 = vpack.c.bf16 %v978_v22, %v977_v21  ;;  %v2288_v17 = vpack.c.bf16 %v317_v16, %v315_v15 }
 0x61a   : > { %2106 = vmatpush3.bf16.msra.mxu1 %v981_v28 }
 0x61b   : > { %2107 = vmatprep.subr.bf16.mxu1 %v2447_v27 }
 0x61e   : > { %2108 = vmatpush3.bf16.msra.mxu1 %v982_v23 }
 0x61f   : > { %2253 = vmatprep.subr.bf16.mxu1 %v2546_v3 }
 0x621   : > { %2110 = vmatmul.mubr.msk.bf16.vlgmr.msra.gmra.mrb[12].mxu1 %vm550_vm1, %v2649_v51 }
 0x622   : > { %2255 = vmatpush3.bf16.msra.mxu1 %v2546_v3 }
 0x623   : > { %2257 = vmatprep.subr.bf16.mxu1 %v2565_v8 }
 0x626   : > { %2259 = vmatpush3.bf16.msra.mxu1 %v2565_v8 }
 0x6f4   : > { %v1017_v30 = vpop.f32.mrb[12].mxu1 }
 0x6f5   : > { %v1030_v32 = vsel %vm550_vm1, %v1017_v30, %v1025_v29  ;;  %v2111_v34 = vpop.f32.mrb[13].mxu1  ;;  %v314_v29 = vld [vmem:[%s2956_s4] sm:$0xff]  ;;  %v316_v30 = vld [vmem:[%s2956_s4 + $0x10] sm:$0xff] }
 0x6f6   : > { %v1020_v37 = vpop.f32.mrb[14].mxu1  ;;  %2129 = vmatprep.mubr.msk.f32.mxu0 %vm762_vm4, %v1030_v32  ;;  %v2290_v32 = vpack.c.bf16 %v316_v30, %v314_v29  ;;  %v319_v34 = vld [vmem:[%s2956_s4 + $0x28] sm:$0xff]  ;;  %v339_v29 = vld [vmem:[%s2957_s5 + $0x78] sm:$0xff] }
 0x6f7   : > { %v1031_v38 = vsel %vm550_vm1, %v1020_v37, %v1027_v35  ;;  %v2112_v39 = vpop.f32.mrb[15].mxu1  ;;  %v321_v35 = vld [vmem:[%s2956_s4 + $0x38] sm:$0xff] }
 0x6f8   : > { %2130 = vmatmul.mubr.msk.f32.vlgmr.msra.gmra.mrb[10].mxu0 %vm762_vm4, %v1031_v38  ;;  %v2292_v37 = vpack.c.bf16 %v321_v35, %v319_v34  ;;  %v318_v38 = vld [vmem:[%s2956_s4 + $0x20] sm:$0xff]  ;;  %v320_v39 = vld [vmem:[%s2956_s4 + $0x30] sm:$0xff] }
 0x6f9   : > { %2153 = vmatprep.mubr.msk.bf16.mxu0 %vm2448_vm3, %v2447_v27  ;;  %v322_v34 = vld [vmem:[%s2956_s4 + $0x40] sm:$0xff] }
 0x7cb   : > { %v2131_v3 = vpop.f32.mrb[10].mxu0 }
 0x7cc   : > { %v1114_v40 = vmax.f32 %v2131_v3, 0.0  ;;  %v1104_v8 = vpop.f32.mrb[11].mxu0  ;;  %v2294_v3 = vpack.c.bf16 %v320_v39, %v318_v38 }
 0x7cd   : > { %v1113_v41 = vmax.f32 %v1104_v8, 0.0  ;;  %v341_v8 = vld [vmem:[%s2957_s5 + $0x88] sm:$0xff] }
 0x7ce   : > { %1295 = vrot.lane.b32.xlu1 %v1114_v40, %s2446_s11 }
 0x7cf   : > { %1293 = vrot.lane.b32.xlu0 %v1113_v41, %s2446_s11  ;;  %2140 = vmatprep.mubr.msk.f32.mxu1 %vm550_vm1, %v1113_v41  ;;  %v324_v41 = vld [vmem:[%s2957_s5] sm:$0xff] }
 0x7d0   : > { %2141 = vmatmul.mubr.msk.f32.vlgmr.msra.gmra.mrb[10].mxu1 %vm550_vm1, %v1114_v40  ;;  %v340_v40 = vld [vmem:[%s2957_s5 + $0x80] sm:$0xff] }
 0x7d1   : > { %2145 = vmatprep.mubr.msk.bf16.mxu1 %vm643_vm2, %v2587_v18 }
 0x8a3   : > { %v2142_v42 = vpop.f32.mrb[10].mxu1 }
 0x8a4   : > { %v1187_v43 = vpop.f32.mrb[11].mxu1 }
 0x8a5   : > { %v1196_v44 = vpack.c.bf16 %v2142_v42, %v1187_v43  ;;  %v2296_v42 = vpack.c.bf16 %v341_v8, %v340_v40  ;;  %v325_v43 = vld [vmem:[%s2957_s5 + $0x8] sm:$0xff] }
 0x8a7   : > { %2143 = vmatprep.subr.bf16.mxu1 %v1196_v44 }
 0x8a8   : > { %2144 = vmatpush3.bf16.msra.mxu1 %v1196_v44  ;;  %v342_v44 = vld [vmem:[%s2957_s5 + $0x90] sm:$0xff] }
 0x8ab   : > { %2146 = vmatmul.mubr.msk.bf16.vlgmr.msra.gmra.mrb[16].mxu1 %vm643_vm2, %v2596_v24 }
 0x8ac   : > { %2201 = vmatprep.mubr.msk.f32.mxu1 %vm2448_vm3, %v2447_v27 }
 0x97e   : > { %v2147_v45 = vpop.f32.mrb[16].mxu1 }
 0x97f   : > { %v1240_v46 = vadd.f32 %v2147_v45, %v2602_v26  ;;  %v1231_v47 = vpop.f32.mrb[17].mxu1  ;;  %v343_v45 = vld [vmem:[%s2957_s5 + $0x98] sm:$0xff] }
 0x980   : > { %v1232_v48 = vadd.f32 %v1231_v47, %v2593_v20  ;;  %v2148_v49 = vpop.f32.mrb[18].mxu1  ;;  %v2300_v47 = vpack.c.bf16 %v343_v45, %v342_v44 }
 0x981   : > { %v1243_v18 = vadd.f32 %v2148_v49, %v2600_v25  ;;  %v1234_v50 = vpop.f32.mrb[19].mxu1  ;;  %v1248_v53 = vmax.f32 %v1240_v46, 0.0  ;;  %v2298_v46 = vpack.c.bf16 %v325_v43, %v324_v41  ;;  %v327_v49 = vld [vmem:[%s2957_s5 + $0x18] sm:$0xff]  ;;  %v356_v41 = vld [vmem:[%s2957_s5 + $0x100] sm:$0xff] }
 0x982   : > { %v1235_v52 = vadd.f32 %v2591_v19, %v1234_v50  ;;  %v1246_v56 = vmax.f32 %v1232_v48, 0.0  ;;  %v1294_v19 = vpop.permute.xlu0 %1293  ;;  %v326_v48 = vld [vmem:[%s2957_s5 + $0x10] sm:$0xff]  ;;  %v345_v50 = vld [vmem:[%s2957_s5 + $0xa8] sm:$0xff] }
 0x983   : > { %v1249_v55 = vmax.f32 %v1243_v18, 0.0  ;;  %v344_v18 = vld [vmem:[%s2957_s5 + $0xa0] sm:$0xff] }
 0x984   : > { %v1247_v57 = vmax.f32 %v1235_v52, 0.0  ;;  %v2302_v52 = vpack.c.bf16 %v327_v49, %v326_v48  ;;  %v2451_v49 = vmov 0  }
 0x985   : > { %v1251_v24 = vpack.c.bf16 %v1249_v55, %v1248_v53  ;;  %v2304_v53 = vpack.c.bf16 %v345_v50, %v344_v18  ;;  %v328_v55 = vld [vmem:[%s2957_s5 + $0x20] sm:$0xff]  ;;  %2377 = vset.pattern.permute.xlu0 %v2451_v49 }
 0x986   : > { %v1250_v58 = vpack.c.bf16 %v1247_v57, %v1246_v56  ;;  %v329_v56 = vld [vmem:[%s2957_s5 + $0x28] sm:$0xff]  ;;  %v346_v57 = vld [vmem:[%s2957_s5 + $0xb0] sm:$0xff] }
 0x988   : > { %2150 = vmatpush3.bf16.msra.mxu0 %v1250_v58  ;;  %v2306_v58 = vpack.c.bf16 %v329_v56, %v328_v55 }
 0x989   : > { %2151 = vmatprep.subr.bf16.mxu0 %v2447_v27 }
 0x98c   : > { %2152 = vmatpush3.bf16.msra.mxu0 %v1251_v24  ;;  %v347_v24 = vld [vmem:[%s2957_s5 + $0xb8] sm:$0xff] }
 0x98d   : > { %2261 = vmatprep.subr.bf16.mxu0 %v2622_v31 }
 0x98f   : > { %2154 = vmatmul.mubr.msk.bf16.vlgmr.msra.gmra.mrb[16].mxu0 %vm550_vm1, %v2649_v51 }
 0x990   : > { %2263 = vmatpush3.bf16.msra.mxu0 %v2622_v31  ;;  %v1296_v31 = vpop.permute.xlu1 %1295 }
 0x991   : > { %2265 = vmatprep.subr.bf16.mxu0 %v2627_v33 }
 0x994   : > { %2267 = vmatpush3.bf16.msra.mxu0 %v2627_v33 }
 0x995   : > { %2269 = vmatprep.subr.bf16.mxu0 %v2638_v36 }
 0x998   : > { %2271 = vmatpush3.bf16.msra.mxu0 %v2638_v36  ;;  %v2449_v36 = vmov 0.0|0.0  }
 0x999   : > { %2273 = vmatprep.subr.bf16.mxu0 %v2663_v54  ;;  %2282 = vmatprep.subr.bf16.mxu1 %v2449_v36 }
 0x99c   : > { %2275 = vmatpush3.bf16.msra.mxu0 %v2663_v54  ;;  %v305_v54 = vld [vmem:[%s2955_s3 + $0x70] sm:$0xff] }
 0x99d   : > { %2176 = vmatprep.subr.bf16.mxu0 %v2447_v27  ;;  %v2283_v61 = vpack.c.bf16 %v306_v60, %v305_v54  ;;  %v350_v54 = vld [vmem:[%s2957_s5 + $0xd0] sm:$0xff]  ;;  %v351_v60 = vld [vmem:[%s2957_s5 + $0xd8] sm:$0xff] }
 0x99f   : > { %2284 = vmatpush3.bf16.msra.mxu1 %v2283_v61 }
 0x9a0   : > { %2285 = vmatprep.subr.bf16.mxu1 %v2449_v36 }
 0x9a3   : > { %2287 = vmatpush3.bf16.msra.mxu1 %v2286_v11 }
 0x9a4   : > { %2297 = vmatprep.subr.bf16.mxu1 %v2296_v42 }
 0xa62   : > { %v1286_v20 = vpop.f32.mrb[16].mxu0 }
 0xa63   : > { %v1299_v25 = vsel %vm550_vm1, %v1286_v20, %v1294_v19  ;;  %v2155_v26 = vpop.f32.mrb[17].mxu0  ;;  %v2308_v19 = vpack.c.bf16 %v347_v24, %v346_v57  ;;  %v330_v20 = vld [vmem:[%s2957_s5 + $0x30] sm:$0xff] }
 0xa64   : > { %v1289_v51 = vpop.f32.mrb[18].mxu0  ;;  %2173 = vmatprep.mubr.msk.f32.mxu0 %vm762_vm4, %v1299_v25  ;;  %v331_v25 = vld [vmem:[%s2957_s5 + $0x38] sm:$0xff]  ;;  %v348_v26 = vld [vmem:[%s2957_s5 + $0xc0] sm:$0xff] }
 0xa65   : > { %v1300_v33 = vsel %vm550_vm1, %v1289_v51, %v1296_v31  ;;  %v2156_v59 = vpop.f32.mrb[19].mxu0  ;;  %v349_v31 = vld [vmem:[%s2957_s5 + $0xc8] sm:$0xff]  ;;  %v2310_v51 = vpack.c.bf16 %v331_v25, %v330_v20 }
 0xa66   : > { %2174 = vmatmul.mubr.msk.f32.vlgmr.msra.gmra.mrb[20].mxu0 %vm762_vm4, %v1300_v33  ;;  %v2312_v33 = vpack.c.bf16 %v349_v31, %v348_v26  ;;  %v332_v59 = vld [vmem:[%s2957_s5 + $0x40] sm:$0xff] }
 0xa67   : > { %2178 = vmatprep.mubr.msk.bf16.mxu0 %vm2448_vm3, %v2447_v27 }
 0xb39   : > { %v2175_v62 = vpop.f32.mrb[20].mxu0 }
 0xb3a   : > { %v1383_v63 = vmax.f32 %v2175_v62, 0.0  ;;  %v1373_v0 = vpop.f32.mrb[21].mxu0  ;;  %v2316_v62 = vpack.c.bf16 %v351_v60, %v350_v54 }
 0xb3b   : > { %v1382_v1 = vmax.f32 %v1373_v0, 0.0  ;;  %v335_v0 = vld [vmem:[%s2957_s5 + $0x58] sm:$0xff] }
 0xb3d   : > { %v1386_v5 = vpack.c.bf16 %v1383_v63, %v1382_v1  ;;  %v334_v63 = vld [vmem:[%s2957_s5 + $0x50] sm:$0xff]  ;;  %v352_v1 = vld [vmem:[%s2957_s5 + $0xe0] sm:$0xff] }
 0xb3e   : > { %v2318_v4 = vpack.c.bf16 %v335_v0, %v334_v63 }
 0xb3f   : > { %2177 = vmatpush3.bf16.msra.mxu0 %v1386_v5  ;;  %v2320_v5 = vpack.c.bf16 %v353_v2, %v352_v1 }
 0xb40   : > { %2276 = vmatprep.subr.bf16.mxu0 %v2449_v36 }
 0xb42   : > { %2179 = vmatmul.mubr.msk.bf16.vlgmr.msra.gmra.mrb[24].mxu0 %vm643_vm2, %v2381_v6  ;;  %v336_v6 = vld [vmem:[%s2957_s5 + $0x60] sm:$0xff] }
 0xb43   : > { %2278 = vmatpush3.bf16.msra.mxu0 %v2277_v7  ;;  %2190 = vmatprep.mubr.msk.f32.mxu0 %vm2448_vm3, %v2447_v27  ;;  %v337_v7 = vld [vmem:[%s2957_s5 + $0x68] sm:$0xff] }
 0xb44   : > { %2279 = vmatprep.subr.bf16.mxu0 %v2449_v36  ;;  %v333_v36 = vld [vmem:[%s2957_s5 + $0x48] sm:$0xff]  ;;  %v2322_v9 = vpack.c.bf16 %v337_v7, %v336_v6 }
 0xb45   : > { %v2314_v61 = vpack.c.bf16 %v333_v36, %v332_v59 }
 0xb47   : > { %2281 = vmatpush3.bf16.msra.mxu0 %v2280_v14 }
 0xb48   : > { %2289 = vmatprep.subr.bf16.mxu0 %v2288_v17 }
 0xc15   : > { %v1429_v21 = vpop.f32.mrb[24].mxu0 }
 0xc16   : > { %v2180_v22 = vpop.f32.mrb[25].mxu0  ;;  %2202 = vmatmul.mubr.msk.f32.vlgmr.msra.gmra.mrb[20].mxu1 %vm550_vm1, %v1429_v21  ;;  %v354_v21 = vld [vmem:[%s2957_s5 + $0xf0] sm:$0xff] }
 0xc17   : > { %v1432_v23 = vpop.f32.mrb[26].mxu0  ;;  %2299 = vmatpush3.bf16.msra.mxu1 %v2298_v46  ;;  %v355_v22 = vld [vmem:[%s2957_s5 + $0xf8] sm:$0xff] }
 0xc18   : > { %2191 = vmatmul.mubr.msk.f32.vlgmr.msra.gmra.mrb[22].mxu0 %vm550_vm1, %v1432_v23  ;;  %v2181_v28 = vpop.f32.mrb[27].mxu0  ;;  %2301 = vmatprep.subr.bf16.mxu1 %v2300_v47  ;;  %v2324_v23 = vpack.c.bf16 %v355_v22, %v354_v21 }
 0xc19   : > { %1651 = vmatprep.mubr.f32.mxu0 %v2447_v27  ;;  %2291 = vmatpush1.bf16.msra.mxu0 %v2290_v32  ;;  %v338_v28 = vld [vmem:[%s2957_s5 + $0x70] sm:$0xff]  ;;  %v323_v32 = vld [vmem:[%s2956_s4 + $0x48] sm:$0xff] }
 0xc1a   : > { %2293 = vmatprep.subr.bf16.mxu0 %v2292_v37  ;;  %v2326_v30 = vpack.c.bf16 %v339_v29, %v338_v28 }
 0xc1b   : > { %2303 = vmatpush3.bf16.msra.mxu1 %v2302_v52 }
 0xc1c   : > { %2305 = vmatprep.subr.bf16.mxu1 %v2304_v53 }
 0xc1d   : > { %2295 = vmatpush1.bf16.msra.mxu0 %v2294_v3  ;;  %v1728_v3 = vlaneseq }
 0xc1f   : > { %2307 = vmatpush3.bf16.msra.mxu1 %v2306_v58  ;;  %v1729_v40 = vshrl.u32 %v1728_v3, 7 }
 0xc20   : > { %2309 = vmatprep.subr.bf16.mxu1 %v2308_v19 }
 0xc21   : > { %vm1730_vm5 = vcmp.lt.s32.totalorder %v1729_v40, 2 }
 0xc22   : > { %v1904_v44 = vsel %vm1730_vm5, 1.0, %v2447_v27 }
 0xc23   : > { %2311 = vmatpush3.bf16.msra.mxu1 %v2310_v51 }
 0xc24   : > { %2313 = vmatprep.subr.bf16.mxu1 %v2312_v33 }
 0xc27   : > { %2315 = vmatpush3.bf16.msra.mxu1 %v2314_v61 }
 0xc28   : > { %2317 = vmatprep.subr.bf16.mxu1 %v2316_v62 }
 0xc2b   : > { %2319 = vmatpush3.bf16.msra.mxu1 %v2318_v4 }
 0xc2c   : > { %2321 = vmatprep.subr.bf16.mxu1 %v2320_v5 }
 0xc2f   : > { %2323 = vmatpush3.bf16.msra.mxu1 %v2322_v9 }
 0xc30   : > { %2325 = vmatprep.subr.bf16.mxu1 %v2324_v23 }
 0xc33   : > { %2327 = vmatpush3.bf16.msra.mxu1 %v2326_v30 }
 0xce9   : > { %v1578_v10 = vpop.f32.mrb[20].mxu1 }
 0xcea   : > { %v2203_v11 = vpop.f32.mrb[21].mxu1 }
 0xceb   : > { %v1505_v12 = vpop.f32.mrb[22].mxu0 }
 0xcec   : > { %v1579_v14 = vadd.f32 %v1578_v10, %v1505_v12  ;;  %v2192_v15 = vpop.f32.mrb[23].mxu0 }
 0xcee   : > { %v1582_v16 = vadd.f32 %v1579_v14, %v313_v13 }
 0xcf0   : > { %v1583_v17 = vmax.f32 %v1582_v16, 0.0 }
 0xcf2   : > { %1903 = vmatmul.mubr.msk.f32.vlgmr.msra.gmra.mrb[28].mxu0 %vm550_vm1, %v1583_v17 }
 0xdc5   : > { %v1653_v35 = vpop.f32.mrb[28].mxu0 }
 0xdc6   : > { %v1655_v37 = vpop.f32.mrb[29].mxu0  ;;  %v1654_v39 = vadd.f32 %v1653_v35, %v322_v34 }
 0xdc7   : > { %v1656_v38 = vadd.f32 %v1655_v37, %v323_v32 }
 0xdc9   : > { %1722 = vmatprep.mubr.f32.mxu1 %v1656_v38 }
 0xdca   : > { %1723 = vmatmul.mubr.f32.vlgmr.msra.gmra.mrb[22].mxu1 %v1654_v39 }
 0xe9d   : > { %v2028_v8 = vpop.f32.mrb[22].mxu1 }
 0xe9e   : > { %v2029_v42 = vpop.f32.mrb[23].mxu1 }
 0xe9f   : > { %v2030_v43 = vadd.f32 %v2029_v42, %v2028_v8 }
 0xea1   : > { %v1725_v45 = vadd.f32 %v2030_v43, %v356_v41 }
 0xea3   : > { %v1733_v46 = vmul.f32 %v1904_v44, %v1725_v45 }
 0xea5   : > { %1735 = vrot.lane.b32.xlu0 %v1733_v46, %s2450_s9 }
 0xea9   : > { %1751 = vrot.lane.b32.xlu0 %v1725_v45, %s2450_s9 }
 0xf17   : > { %v1736_v47 = vpop.permute.xlu0 %1735 }
 0xf18   : > { %v1739_v48 = vsel %vm1738_vm6, %v1736_v47, 0.0 }
 0xf19   : > { %1740 = vadd.xlane.f32.xlu1 %v1739_v48 }
 0xf1b   : > { %v1752_v57 = vpop.permute.xlu0 %1751 }
 0xf1c   : > { %v1754_v24 = vadd.f32 %v1752_v57, %v1725_v45 }
 0xfa6   : > { %v1741_v18 = vpop.xlane.xlu1 %1740 }
 0xfa7   : > { %v1742_v50 = vrot.slane %v1741_v18, 4 }
 0xfa9   : > { %v1743_v52 = vadd.f32 %v1742_v50, %v1741_v18 }
 0xfab   : > { %v1744_v53 = vrot.slane %v1743_v52, 2 }
 0xfad   : > { %v1745_v55 = vadd.f32 %v1744_v53, %v1743_v52 }
 0xfaf   : > { %v1746_v56 = vrot.slane %v1745_v55, 1 }
 0xfb1   : > { %v1747_v27 = vadd.f32 %v1746_v56, %v1745_v55 }
 0xfb3   : > { %2330 = vpush %v1747_v27 }
 0xfe4   : > { %s2331_s11 = spop %2330 }
 0xfe5   : > { %s1749_s20 = smul.f32 0.5, %s2331_s11 }
 0xfe7   : > { %v1755_v58 = vstv %s1749_s20 }
 0xfe8   : > { %v1756_v19 = vsub.f32 %v1754_v24, %v1755_v58 }
 0xfea   : > { %1759 = vperm.xlu0 %2377, %v1756_v19  }
0x1069   : > { %v1760_v20 = vpop.permute.xlu0 %1759 }
0x106a   : > { %1762 = vst [vmem:[%s274_s15] sm:$0xff] %v1760_v20 }
0x106b   : > { %2395 = shalt.err (!%p2392_p3)
}
0x106c   : > { %s2396_s9 = scalar_lea.hbm %s2912_s19, 128  ;;  %s2400_s10 = scalar_lea.hbm %s2958_s6, 512 }
0x106d   : > { %p2397_p4 = scmp.ne.s32.totalorder %s2912_s19, %s2396_s9  ;;  %p2401_p9 = scmp.lt.u32.totalorder %s2912_s19, %s2958_s6 }
0x106e   : > { %p2402_p10 = scmp.lt.u32.totalorder %s2400_s10, %s2396_s9  ;;  %p2404_p12 = scmp.lt.u32.totalorder %s2396_s9, %s2912_s19 }
0x106f   : > { %p2398_p7 = pnand %p2397_p4, %p2526_p5 }
0x1070   : > { %p2403_p11 = por %p2402_p10, %p2401_p9 }
0x1071   : > { %p2399_p8 = pneg %p2398_p7 }
0x1072   : > { %p2405_p13 = por %p2404_p12, %p2403_p11 }
0x1074   : > { %p2406_p0 = pnand %p2405_p13, %p2399_p8 }
0x1076   : > { %2409 = shalt.err (!%p2406_p0)
}
0x1077   : > { %2332 = dma.vmem_to_hbm [thread:$0]  (%p2526_p5), %s2907_s13, 128, %s2912_s19, %s1764_s26  }
0x1078 PF: > { %p2338_p1 = scmp.ge.s32.totalorder %s2444_s24, 2  ;;  %s1789_s14 = sand.u32 1, %s2432_s21  }
0x1079   : > { %s1790_s17 = scalar_lea.sflag [#allocation3], %s1789_s14 }
0x107a   : > { %p2335_p2 = pnand %p2338_p1, %p2530_p6 }
0x107c   : > { %2427 = dma.done.wait (!%p2335_p2), %s1790_s17, 128  }
0x107d   : > { %2429 = vsyncadd (!%p2335_p2), %s1790_s17, 4294967168  ;;  %p16_p3 = scmp.ge.s32.totalorder %s2513_s27, 6   ;;  %s2961_s21 = smov %s2436_s22 }
0x107e   : > { %s2962_s22 = smov %s2440_s23  ;;  %s2963_s23 = smov %s2524_s30 }
0x107f   : > { %s2964_s24 = smov %s2513_s27  ;;  %18 = sbr.rel (!%p16_p3) target bundleno = 3 (0x3), region = 85 }
0x1086   :  { %1795 = vsyncpa [#allocation3], 1 }
0x1087   :  { %1797 = vsyncpa [#allocation3 + $0x1], 1 }

</bundles_post_ra>
